<compile_context>
chip_gen: v7x
topology: tpu7x:2x2x1
jax: 0.10.0
libtpu: 0.0.40
codegen_flags: <defaults>
</compile_context>

<pallas_src>
import jax
import jax.numpy as jnp
from jax.experimental import pallas as pl
from jax.experimental.pallas import tpu as pltpu

B = 2     # batch
C = 3     # number of query positions (p)
L = 8     # number of key/value positions (x)
H = 256   # hidden_size


# ---------------------------------------------------------------------------
# Fused Pallas kernel
# ---------------------------------------------------------------------------

def _relation_attention_kernel(p_ref, x_ref, wv_hbm, bv_ref, sw_ref, mask_ref,
                               sb_ref, o_ref, wv_vmem, dma_sem):
    b, c, h = p_ref.shape
    l = x_ref.shape[1]

    # Kick off the value-weight DMA immediately; it overlaps with the score math
    # below and is only waited on right before the MXU matmul.
    wv_cp = pltpu.make_async_copy(wv_hbm, wv_vmem, dma_sem)
    wv_cp.start()

    p = p_ref[...]                                   # [B, C, H] f32
    x = x_ref[...]                                   # [B, L, H] f32

    # Folded score: row 0 acts on p (query path), row 1 acts on x (key path).
    sw_p = sw_ref[0:1, :]                            # [1, H]
    sw_x = sw_ref[1:2, :]                            # [1, H]
    sq = jnp.sum(p * sw_p[None, :, :], axis=-1)      # [B, C]
    sk = jnp.sum(x * sw_x[None, :, :], axis=-1)      # [B, L]
    s = sq[:, :, None] + sk[:, None, :] + sb_ref[0]  # [B, C, L]  (scalar bias via SMEM)

    # masked_fill(mask == 0, -1e9) is applied BEFORE leaky_relu, as in PyTorch.
    s = jnp.where(mask_ref[...][:, None, :] == 0.0, -1e9, s)
    s = jnp.where(s >= 0, s, 0.2 * s)                # F.leaky_relu(score, 0.2)

    # softmax over dim 2 (L), numerically stabilized; reciprocal goes to the EUP.
    s = s - jnp.max(s, axis=-1, keepdims=True)
    e = jnp.exp(s)
    attn = e * pl.reciprocal(jnp.sum(e, axis=-1, keepdims=True), approx=True)  # [B,C,L]

    # Value projection: one bf16 MXU matmul over all B*L rows (f32 accumulate).
    wv_cp.wait()
    x2 = x.reshape(b * l, h).astype(jnp.bfloat16)                         # [B*L, H]
    v = jnp.dot(x2, wv_vmem[...], preferred_element_type=jnp.float32)     # [B*L, H]
    v = (v + bv_ref[...]).reshape(b, l, h)                                # [B, L, H]

    # attn @ v: tiny K (=L), so a pure-VPU/XLU weighted sum in f32 beats more MXU
    # fills/drains.  One full lane-dense store for the whole output.
    out = jnp.sum(attn[:, :, :, None] * v[:, None, :, :], axis=2) + p     # [B, C, H]
    o_ref[...] = out.astype(o_ref.dtype)


def relation_attention(params, p, x, mask=None):
    b, c, h = p.shape
    l = x.shape[1]
    if mask is None:
        mask = jnp.ones((b, l), jnp.float32)
    else:
        mask = mask.astype(jnp.float32)
    return pl.pallas_call(
        _relation_attention_kernel,
        out_shape=jax.ShapeDtypeStruct((b, c, h), jnp.float32),
        grid=(1,),
        in_specs=[
            pl.BlockSpec((b, c, h), lambda i: (0, 0, 0)),        # p
            pl.BlockSpec((b, l, h), lambda i: (0, 0, 0)),        # x
            pl.BlockSpec(memory_space=pl.ANY),                   # value weight (bf16, manual DMA)
            pl.BlockSpec((1, h), lambda i: (0, 0)),              # value bias
            pl.BlockSpec((2, h), lambda i: (0, 0)),              # folded score weights
            pl.BlockSpec((b, l), lambda i: (0, 0)),              # mask
            pl.BlockSpec(memory_space=pltpu.MemorySpace.SMEM),   # folded score bias (1,)
        ],
        out_specs=pl.BlockSpec((b, c, h), lambda i: (0, 0, 0)),
        scratch_shapes=[
            pltpu.VMEM((h, h), jnp.bfloat16),                    # wv landing buffer
            pltpu.SemaphoreType.DMA(()),                         # wv DMA completion
        ],
        compiler_params=pltpu.CompilerParams(dimension_semantics=("arbitrary",)),
    )(p, x, params["wv"], params["bv"], params["sw"], mask, params["sb"])


# ---------------------------------------------------------------------------
# Offline parameter folding (PyTorch layout -> kernel layout), done once at init.
# ---------------------------------------------------------------------------

def fold_relation_attention_params(raw):
    h = raw["query_w"].shape[0]
    ws_q = raw["score_w"][0, :h]                     # score weight, query half
    ws_k = raw["score_w"][0, h:]                     # score weight, key half
    # q = p @ Wq^T + bq ; sq = q·ws_q  ==>  sq = p @ (Wq^T @ ws_q) + bq·ws_q
    sw_p = raw["query_w"].T @ ws_q                   # [H]
    sw_x = raw["key_w"].T @ ws_k                     # [H]
    sb = raw["query_b"] @ ws_q + raw["key_b"] @ ws_k + raw["score_b"][0]
    return {
        "wv": raw["value_w"].T.astype(jnp.bfloat16),  # [H, H] bf16: v = x @ wv + bv
        "bv": raw["value_b"].reshape(1, h),
        "sw": jnp.stack([sw_p, sw_x], axis=0),        # [2, H]
        "sb": jnp.reshape(sb, (1,)).astype(jnp.float32),
    }


def init_raw_params(key):
    ks = jax.random.split(key, 8)

    def rnd(k, shape, scale=0.05):
        return scale * jax.random.normal(k, shape, dtype=jnp.float32)

    # PyTorch nn.Linear layout: weight [out, in], bias [out].
    return {
        "query_w": rnd(ks[0], (H, H)), "query_b": rnd(ks[1], (H,)),
        "key_w":   rnd(ks[2], (H, H)), "key_b":   rnd(ks[3], (H,)),
        "value_w": rnd(ks[4], (H, H)), "value_b": rnd(ks[5], (H,)),
        "score_w": rnd(ks[6], (1, 2 * H)), "score_b": rnd(ks[7], (1,)),
    }


# ---------------------------------------------------------------------------
# Pure-JAX reference (unfolded, follows the PyTorch code literally)
# ---------------------------------------------------------------------------

def relation_attention_ref(raw, p, x, mask=None):
    hp = jax.lax.Precision.HIGHEST
    q = jnp.einsum('bch,oh->bco', p, raw["query_w"], precision=hp) + raw["query_b"]
    k = jnp.einsum('blh,oh->blo', x, raw["key_w"], precision=hp) + raw["key_b"]
    v = jnp.einsum('blh,oh->blo', x, raw["value_w"], precision=hp) + raw["value_b"]
    ws = raw["score_w"][0]
    score = (jnp.einsum('bch,h->bc', q, ws[:H], precision=hp)[:, :, None]
             + jnp.einsum('blh,h->bl', k, ws[H:], precision=hp)[:, None, :]
             + raw["score_b"][0])
    if mask is not None:
        score = jnp.where(mask[:, None, :] == 0, -1e9, score)
    score = jnp.where(score >= 0, score, 0.2 * score)
    attn = jax.nn.softmax(score, axis=2)
    return jnp.einsum('bcl,bld->bcd', attn, v, precision=hp) + p


# ---------------------------------------------------------------------------
# Driver
# ---------------------------------------------------------------------------

if __name__ == "__main__":
    key = jax.random.PRNGKey(0)
    kp, kx, kw = jax.random.split(key, 3)
    p = jax.random.normal(kp, (B, C, H), dtype=jnp.float32)
    x = jax.random.normal(kx, (B, L, H), dtype=jnp.float32)

    raw = init_raw_params(kw)
    params = fold_relation_attention_params(raw)

    ra = jax.jit(relation_attention)

    # mask=None path
    out = jax.block_until_ready(ra(params, p, x))
    assert out.shape == (B, C, H)
    assert bool(jnp.all(jnp.isfinite(out)))
    ref = relation_attention_ref(raw, p, x)
    assert bool(jnp.allclose(out, ref, atol=2e-2, rtol=2e-2)), \
        float(jnp.max(jnp.abs(out - ref)))

    # partially masked path
    mask = jnp.concatenate(
        [jnp.ones((B, L // 2)), jnp.zeros((B, L - L // 2))], axis=1
    ).astype(jnp.float32)
    out_m = jax.block_until_ready(ra(params, p, x, mask))
    ref_m = relation_attention_ref(raw, p, x, mask)
    assert bool(jnp.all(jnp.isfinite(out_m)))
    assert bool(jnp.allclose(out_m, ref_m, atol=2e-2, rtol=2e-2)), \
        float(jnp.max(jnp.abs(out_m - ref_m)))

    # fully-masked batch row (locks in the uniform-softmax degenerate behavior)
    mask_all = jnp.concatenate(
        [jnp.zeros((1, L)), jnp.ones((B - 1, L))], axis=0
    ).astype(jnp.float32)
    out_a = jax.block_until_ready(ra(params, p, x, mask_all))
    ref_a = relation_attention_ref(raw, p, x, mask_all)
    assert bool(jnp.all(jnp.isfinite(out_a)))
    assert bool(jnp.allclose(out_a, ref_a, atol=2e-2, rtol=2e-2)), \
        float(jnp.max(jnp.abs(out_a - ref_a)))

    print("KERNEL_OK")
</pallas_src>

<mosaic_0001>
module attributes {stable_mosaic.version = 11 : i64} {
  func.func @_relation_attention_kernel(%arg0: i32, %arg1: memref<2x3x256xf32, #tpu.memory_space<vmem>>, %arg2: memref<2x8x256xf32, #tpu.memory_space<vmem>>, %arg3: memref<256x256xbf16, #tpu.memory_space<any>>, %arg4: memref<1x256xf32, #tpu.memory_space<vmem>>, %arg5: memref<2x256xf32, #tpu.memory_space<vmem>>, %arg6: memref<2x8xf32, #tpu.memory_space<vmem>>, %arg7: memref<1xf32, #tpu.memory_space<smem>>, %arg8: memref<2x3x256xf32, #tpu.memory_space<vmem>>, %arg9: memref<256x256xbf16, #tpu.memory_space<vmem>>, %arg10: memref<!tpu.dma_semaphore, #tpu.memory_space<semaphore_mem>>) attributes {dimension_semantics = [#tpu.dimension_semantics<arbitrary>], iteration_bounds = array<i64: 1>, scalar_prefetch = 0 : i64, scratch_operands = 2 : i64, tpu.core_type = #tpu.core_type<tc>, window_params = [{pipeline_mode = #tpu.pipeline_mode<synchronous>, transform_indices = @transform_0, window_bounds = array<i64: 2, 3, 256>}, {pipeline_mode = #tpu.pipeline_mode<synchronous>, transform_indices = @transform_1, window_bounds = array<i64: 2, 8, 256>}, {}, {pipeline_mode = #tpu.pipeline_mode<synchronous>, transform_indices = @transform_3, window_bounds = array<i64: 1, 256>}, {pipeline_mode = #tpu.pipeline_mode<synchronous>, transform_indices = @transform_4, window_bounds = array<i64: 2, 256>}, {pipeline_mode = #tpu.pipeline_mode<synchronous>, transform_indices = @transform_5, window_bounds = array<i64: 2, 8>}, {transform_indices = @transform_6, window_bounds = array<i64: 1>}, {pipeline_mode = #tpu.pipeline_mode<synchronous>, transform_indices = @transform_7, window_bounds = array<i64: 2, 3, 256>}]} {
    tpu.enqueue_dma source(%arg3 : memref<256x256xbf16, #tpu.memory_space<any>>) target(%arg9 : memref<256x256xbf16, #tpu.memory_space<vmem>>) target_semaphore(%arg10 : memref<!tpu.dma_semaphore, #tpu.memory_space<semaphore_mem>>)
    %c0 = arith.constant 0 : index
    %c0_0 = arith.constant 0 : index
    %c0_1 = arith.constant 0 : index
    %0 = vector.load %arg1[%c0, %c0_0, %c0_1] : memref<2x3x256xf32, #tpu.memory_space<vmem>>, vector<2x3x256xf32>
    %c0_2 = arith.constant 0 : index
    %c0_3 = arith.constant 0 : index
    %c0_4 = arith.constant 0 : index
    %1 = vector.load %arg2[%c0_2, %c0_3, %c0_4] : memref<2x8x256xf32, #tpu.memory_space<vmem>>, vector<2x8x256xf32>
    %c0_5 = arith.constant 0 : index
    %c0_6 = arith.constant 0 : index
    %2 = vector.load %arg5[%c0_5, %c0_6] : memref<2x256xf32, #tpu.memory_space<vmem>>, vector<1x256xf32>
    %c1 = arith.constant 1 : index
    %c0_7 = arith.constant 0 : index
    %3 = vector.load %arg5[%c1, %c0_7] : memref<2x256xf32, #tpu.memory_space<vmem>>, vector<1x256xf32>
    %4 = vector.shape_cast %2 : vector<1x256xf32> to vector<1x1x256xf32>
    %5 = vector.broadcast %4 : vector<1x1x256xf32> to vector<2x3x256xf32>
    %6 = arith.mulf %0, %5 : vector<2x3x256xf32>
    %cst = arith.constant dense<0.000000e+00> : vector<2x3xf32>
    %7 = vector.multi_reduction <add>, %6, %cst [2] : vector<2x3x256xf32> to vector<2x3xf32>
    %8 = vector.shape_cast %3 : vector<1x256xf32> to vector<1x1x256xf32>
    %9 = vector.broadcast %8 : vector<1x1x256xf32> to vector<2x8x256xf32>
    %10 = arith.mulf %1, %9 : vector<2x8x256xf32>
    %cst_8 = arith.constant dense<0.000000e+00> : vector<2x8xf32>
    %11 = vector.multi_reduction <add>, %10, %cst_8 [2] : vector<2x8x256xf32> to vector<2x8xf32>
    %12 = vector.shape_cast %7 : vector<2x3xf32> to vector<2x3x1xf32>
    %13 = vector.shape_cast %11 : vector<2x8xf32> to vector<2x1x8xf32>
    %14 = vector.broadcast %12 : vector<2x3x1xf32> to vector<2x3x8xf32>
    %15 = vector.broadcast %13 : vector<2x1x8xf32> to vector<2x3x8xf32>
    %16 = arith.addf %14, %15 : vector<2x3x8xf32>
    %c0_9 = arith.constant 0 : index
    %17 = memref.load %arg7[%c0_9] : memref<1xf32, #tpu.memory_space<smem>>
    %18 = vector.broadcast %17 : f32 to vector<2x3x8xf32>
    %19 = arith.addf %16, %18 : vector<2x3x8xf32>
    %c0_10 = arith.constant 0 : index
    %c0_11 = arith.constant 0 : index
    %20 = vector.load %arg6[%c0_10, %c0_11] : memref<2x8xf32, #tpu.memory_space<vmem>>, vector<2x8xf32>
    %21 = vector.shape_cast %20 : vector<2x8xf32> to vector<2x1x8xf32>
    %cst_12 = arith.constant 0.000000e+00 : f32
    %22 = vector.broadcast %cst_12 : f32 to vector<2x1x8xf32>
    %23 = arith.cmpf oeq, %21, %22 : vector<2x1x8xf32>
    %cst_13 = arith.constant -1.000000e+09 : f32
    %24 = vector.shape_cast %23 : vector<2x1x8xi1> to vector<2x1x8xi1>
    %25 = vector.broadcast %24 : vector<2x1x8xi1> to vector<2x3x8xi1>
    %26 = vector.broadcast %cst_13 : f32 to vector<2x3x8xf32>
    %27 = arith.select %25, %26, %19 : vector<2x3x8xi1>, vector<2x3x8xf32>
    %cst_14 = arith.constant 0.000000e+00 : f32
    %28 = vector.broadcast %cst_14 : f32 to vector<2x3x8xf32>
    %29 = arith.cmpf oge, %27, %28 : vector<2x3x8xf32>
    %cst_15 = arith.constant 2.000000e-01 : f32
    %30 = vector.broadcast %cst_15 : f32 to vector<2x3x8xf32>
    %31 = arith.mulf %30, %27 : vector<2x3x8xf32>
    %32 = arith.select %29, %27, %31 : vector<2x3x8xi1>, vector<2x3x8xf32>
    %cst_16 = arith.constant dense<0xFF800000> : vector<2x3xf32>
    %33 = vector.multi_reduction <maximumf>, %32, %cst_16 [2] : vector<2x3x8xf32> to vector<2x3xf32>
    %34 = vector.shape_cast %33 : vector<2x3xf32> to vector<2x3x1xf32>
    %35 = vector.broadcast %34 : vector<2x3x1xf32> to vector<2x3x8xf32>
    %36 = arith.subf %32, %35 : vector<2x3x8xf32>
    %37 = math.exp %36 : vector<2x3x8xf32>
    %cst_17 = arith.constant dense<0.000000e+00> : vector<2x3xf32>
    %38 = vector.multi_reduction <add>, %37, %cst_17 [2] : vector<2x3x8xf32> to vector<2x3xf32>
    %39 = vector.shape_cast %38 : vector<2x3xf32> to vector<2x3x1xf32>
    %40 = tpu.reciprocal %39 {approx = true} : vector<2x3x1xf32> -> vector<2x3x1xf32>
    %41 = vector.broadcast %40 : vector<2x3x1xf32> to vector<2x3x8xf32>
    %42 = arith.mulf %37, %41 : vector<2x3x8xf32>
    tpu.wait_dma2 semaphore(%arg10 : memref<!tpu.dma_semaphore, #tpu.memory_space<semaphore_mem>>) src(%arg3 : memref<256x256xbf16, #tpu.memory_space<any>>) dst(%arg9 : memref<256x256xbf16, #tpu.memory_space<vmem>>)
    %43 = vector.shape_cast %1 : vector<2x8x256xf32> to vector<16x256xf32>
    %44 = arith.truncf %43 : vector<16x256xf32> to vector<16x256xbf16>
    %c0_18 = arith.constant 0 : index
    %c0_19 = arith.constant 0 : index
    %45 = vector.load %arg9[%c0_18, %c0_19] : memref<256x256xbf16, #tpu.memory_space<vmem>>, vector<256x256xbf16>
    %cst_20 = arith.constant dense<0.000000e+00> : vector<16x256xf32>
    %46 = tpu.matmul %44, %45, %cst_20 {dimension_numbers = #tpu.dot_dimension_numbers<[1], [0], [0], [1], [0, 0, 1, 1], [], []>} : vector<16x256xbf16>, vector<256x256xbf16>, vector<16x256xf32> -> vector<16x256xf32>
    %c0_21 = arith.constant 0 : index
    %c0_22 = arith.constant 0 : index
    %47 = vector.load %arg4[%c0_21, %c0_22] : memref<1x256xf32, #tpu.memory_space<vmem>>, vector<1x256xf32>
    %48 = vector.broadcast %47 : vector<1x256xf32> to vector<16x256xf32>
    %49 = arith.addf %46, %48 : vector<16x256xf32>
    %50 = vector.shape_cast %49 : vector<16x256xf32> to vector<2x8x256xf32>
    %51 = vector.shape_cast %42 : vector<2x3x8xf32> to vector<2x3x8x1xf32>
    %52 = vector.shape_cast %50 : vector<2x8x256xf32> to vector<2x1x8x256xf32>
    %53 = vector.broadcast %51 : vector<2x3x8x1xf32> to vector<2x3x8x256xf32>
    %54 = vector.broadcast %52 : vector<2x1x8x256xf32> to vector<2x3x8x256xf32>
    %55 = arith.mulf %53, %54 : vector<2x3x8x256xf32>
    %cst_23 = arith.constant dense<0.000000e+00> : vector<2x3x256xf32>
    %56 = vector.multi_reduction <add>, %55, %cst_23 [2] : vector<2x3x8x256xf32> to vector<2x3x256xf32>
    %57 = arith.addf %56, %0 : vector<2x3x256xf32>
    %c0_24 = arith.constant 0 : index
    %c0_25 = arith.constant 0 : index
    %c0_26 = arith.constant 0 : index
    %58 = vector.load %arg8[%c0_24, %c0_25, %c0_26] : memref<2x3x256xf32, #tpu.memory_space<vmem>>, vector<2x3x256xf32>
    tpu.vector_store %arg8[%c0_24, %c0_25, %c0_26], %57 {strides = array<i32>} : memref<2x3x256xf32, #tpu.memory_space<vmem>>, vector<2x3x256xf32>,
    return
  }
  func.func @transform_0(%arg0: i32) -> (i32, i32, i32) {
    %c0_i32 = arith.constant 0 : i32
    %c0_i32_0 = arith.constant 0 : i32
    %c0_i32_1 = arith.constant 0 : i32
    %c0_i32_2 = arith.constant 0 : i32
    return %c0_i32, %c0_i32_0, %c0_i32_1 : i32, i32, i32
  }
  func.func @transform_1(%arg0: i32) -> (i32, i32, i32) {
    %c0_i32 = arith.constant 0 : i32
    %c0_i32_0 = arith.constant 0 : i32
    %c0_i32_1 = arith.constant 0 : i32
    %c0_i32_2 = arith.constant 0 : i32
    return %c0_i32, %c0_i32_0, %c0_i32_1 : i32, i32, i32
  }
  func.func @transform_3(%arg0: i32) -> (i32, i32) {
    %c0_i32 = arith.constant 0 : i32
    %c0_i32_0 = arith.constant 0 : i32
    %c0_i32_1 = arith.constant 0 : i32
    return %c0_i32, %c0_i32_0 : i32, i32
  }
  func.func @transform_4(%arg0: i32) -> (i32, i32) {
    %c0_i32 = arith.constant 0 : i32
    %c0_i32_0 = arith.constant 0 : i32
    %c0_i32_1 = arith.constant 0 : i32
    return %c0_i32, %c0_i32_0 : i32, i32
  }
  func.func @transform_5(%arg0: i32) -> (i32, i32) {
    %c0_i32 = arith.constant 0 : i32
    %c0_i32_0 = arith.constant 0 : i32
    %c0_i32_1 = arith.constant 0 : i32
    return %c0_i32, %c0_i32_0 : i32, i32
  }
  func.func @transform_6(%arg0: i32) -> i32 {
    %c0_i32 = arith.constant 0 : i32
    %c0_i32_0 = arith.constant 0 : i32
    return %c0_i32 : i32
  }
  func.func @transform_7(%arg0: i32) -> (i32, i32, i32) {
    %c0_i32 = arith.constant 0 : i32
    %c0_i32_0 = arith.constant 0 : i32
    %c0_i32_1 = arith.constant 0 : i32
    %c0_i32_2 = arith.constant 0 : i32
    return %c0_i32, %c0_i32_0, %c0_i32_1 : i32, i32, i32
  }
}

</mosaic_0001>

<bundles_post_ra>
// kernel: relation_attention.1
= control target key start
LH: loop header
LB: loop body
LE: loop exit
PB: predicated region body
PF: predicated region fallthrough
CT: control target
= control target key end

     0   :  { %s29_s24 = sld [smem:[#allocation0]]   ;;  %v70_v0 = vlaneseq  ;;  %s541_s25 = smov [#allocation2]   ;;  %vm88_vm0 = vcmask 1042432   ;;  %v549_v35 = vmov 1966171168   ;;  %v550_v42 = vmov 0   ;;  %s736_s0 = inlined_call_operand.vmem [shape: f32[2,3,256], index: 0, kind: input, shape index: {}]   ;;  %s737_s1 = inlined_call_operand.vmem [shape: f32[2,8,256], index: 1, kind: input, shape index: {}]   ;;  %s738_s2 = inlined_call_operand.hbm [shape: bf16[256,256], index: 2, kind: input, shape index: {}]   ;;  %s739_s3 = inlined_call_operand.vmem [shape: f32[1,256], index: 3, kind: input, shape index: {}]   ;;  %s740_s4 = inlined_call_operand.vmem [shape: f32[2,256], index: 4, kind: input, shape index: {}]   ;;  %s741_s5 = inlined_call_operand.vmem [shape: f32[2,8], index: 5, kind: input, shape index: {}]   ;;  %s742_s6 = inlined_call_operand.<no memory space> [shape: f32[1], index: 6, kind: input, shape index: {}]   ;;  %s743_s7 = inlined_call_operand.vmem [shape: f32[2,3,256], index: 7, kind: output, shape index: {}]  }
   0x1   :  { %s37_s26 = sshll.u32 %s541_s25, 4  ;;  %s542_s27 = smov 256   ;;  %v155_v36 = vunpack.c.l.s4 %v549_v35  ;;  %v141_v51 = vstv %s742_s6  ;;  %vm192_vm5 = vcmask 59392   ;;  %vm132_vm8 = vcmask 1041409   ;;  %s38_s26 = int_to_ptr.vmem [resolvable:$true] %s37_s26 }
   0x2   :  { %41 = sst [smem:[#allocation6]] %s542_s27  ;;  %v591_v1 = vshrl.u32 %v70_v0, 7  ;;  %v123_v2 = vand.u32 127, %v70_v0  ;;  %s543_s28 = smov 2   ;;  %vm133_vm9 = vcmask 1042434  }
   0x3   :  { %43 = sst [smem:[#allocation6 + $0x1]] %s542_s27  ;;  %s544_s29 = smov 64   ;;  %v156_v37 = vunpack.c.0.s8 %v155_v36 }
   0x4   :  { %45 = sst [smem:[#allocation6 + $0x2]] %s543_s28  ;;  %v594_v3 = vsub.s32 %v123_v2, %v591_v1  ;;  %s545_s8 = smov 128   ;;  %v600_v4 = vsub.s32 0, %v591_v1  ;;  %v603_v5 = vsub.s32 1, %v591_v1 }
   0x5   :  { %47 = sst [smem:[#allocation6 + $0x3]] %s544_s29  ;;  %s546_s10 = smov 4   ;;  %v159_v38 = vsub.s32 %v156_v37, %v591_v1 }
   0x6   :  { %s516_s30 = sshll.u32 %s29_s24, 26  ;;  %49 = sst [smem:[#allocation6 + $0x4]] %s545_s8 }
   0x7   :  { %s517_s9 = sadd.s32 134217728, %s516_s30  ;;  %51 = sst [smem:[#allocation6 + $0x5]] %s543_s28 }
   0x8   :  { %53 = sst [smem:[#allocation6 + $0x6]] %s545_s8  ;;  %s547_s11 = smov [#allocation3]  }
   0x9   :  { %55 = sst [smem:[#allocation6 + $0x7]] %s544_s29  ;;  %s548_s12 = smov [#allocation5]  }
   0xa   :  { %57 = sst [smem:[#allocation6 + $0x8]] %s546_s10 }
   0xb   :  { %59 = dma.general %s738_s2, 4096, %s38_s26, %s547_s11, %s548_s12, [#allocation6], %s517_s9, 0  }
   0xc   :  { %v608_v6 = vld [vmem:[%s737_s1] sm:$0xff]  ;;  %v613_v7 = vld [vmem:[%s737_s1 + $0x8] sm:$0xff]  ;;  %v626_v12 = vld [vmem:[%s737_s1 + $0x10] sm:$0xff] }
   0xd   :  { %v518_v8 = vld [vmem:[%s740_s4 + $0x1] ss:$2 sm:$0x3]  ;;  %v66_v11 = vld [vmem:[%s740_s4] ss:$2 sm:$0x3] }
   0xe   :  { %v103_v9 = vrot.slane %v518_v8, %v600_v4  ;;  %v107_v10 = vrot.slane %v518_v8, %v603_v5  ;;  %v73_v13 = vrot.slane %v66_v11, %v600_v4  ;;  %v77_v14 = vrot.slane %v66_v11, %v603_v5  ;;  %v633_v15 = vld [vmem:[%s737_s1 + $0x18] sm:$0xff]  ;;  %v640_v18 = vld [vmem:[%s736_s0] sm:$0x77]  ;;  %v647_v21 = vld [vmem:[%s736_s0 + $0x8] sm:$0x77] }
   0xf   :  { %v519_v39 = vld.sshfl [vmem:[%s741_s5] sm:$0x11 pattern:$0x75316420] }
  0x10   :  { %v110_v16 = vmul.f32 %v103_v9, %v608_v6  ;;  %v111_v17 = vmul.f32 %v107_v10, %v613_v7  ;;  %v112_v19 = vmul.f32 %v103_v9, %v626_v12  ;;  %v113_v20 = vmul.f32 %v107_v10, %v633_v15 }
  0x11   :  { %v78_v22 = vcombine.low %v73_v13, %v77_v14  ;;  %v160_v40 = vrot.slane %v519_v39, %v159_v38  ;;  %v153_v41 = vcombine.high %v519_v39, %v519_v39 }
  0x12   :  { %v114_v23 = vadd.f32 %v111_v17, %v110_v16  ;;  %v117_v26 = vadd.f32 %v113_v20, %v112_v19 }
  0x13   :  { %v80_v24 = vmul.f32 %v78_v22, %v640_v18  ;;  %v81_v25 = vmul.f32 %v78_v22, %v647_v21  ;;  %vm170_vm1 = vcmp.eq.f32.partialorder %v160_v40, 0.0  ;;  %v167_v45 = vrot.slane %v153_v41, %v159_v38 }
  0x14   :  { %115 = vadd.xlane.f32.xlu0 %v114_v23  ;;  %v172_v43 = vsel %vm170_vm1, 1, %v550_v42 }
  0x15   :  { %v84_v27 = vcombine.high %v80_v24, %v80_v24  ;;  %v89_v28 = vsel %vm88_vm0, %v80_v24, 0.0  ;;  %v85_v29 = vcombine.high %v81_v25, %v81_v25  ;;  %v94_v31 = vsel %vm88_vm0, %v81_v25, 0.0 }
  0x16   :  { %v177_v44 = vrot.slane %v172_v43, %v600_v4  ;;  %vm171_vm2 = vcmp.eq.f32.partialorder %v167_v45, 0.0 }
  0x17   :  { %v90_v30 = vsel %vm88_vm0, %v84_v27, 0.0  ;;  %v95_v32 = vsel %vm88_vm0, %v85_v29, 0.0  ;;  %v173_v46 = vsel %vm171_vm2, 1, %v550_v42 }
  0x18   :  { %v91_v33 = vadd.f32 %v90_v30, %v89_v28  ;;  %118 = vadd.xlane.f32.xlu0 %v117_v26  ;;  %v96_v34 = vadd.f32 %v95_v32, %v94_v31  ;;  %v181_v47 = vrot.slane %v173_v46, %v600_v4  ;;  %vm182_vm3 = vcmp.eq.s32.totalorder %v177_v44, 1 }
  0x1a   :  { %92 = vadd.xlane.f32.xlu1 %v91_v33  ;;  %vm183_vm6 = vcmp.eq.s32.totalorder %v181_v47, 1 }
  0x1e   :  { %97 = vadd.xlane.f32.xlu1 %v96_v34 }
  0xa1   :  { %v116_v48 = vpop.xlane.xlu0 %115 }
  0xa2   :  { %v127_v49 = vrot.slane %v116_v48, %v594_v3 }
  0xa5   :  { %v119_v50 = vpop.xlane.xlu0 %118 }
  0xa6   :  { %v131_v54 = vrot.slane %v119_v50, %v594_v3 }
  0xa7   :  { %v93_v52 = vpop.xlane.xlu1 %92 }
  0xa8   :  { %v138_v53 = vadd.f32 %v127_v49, %v93_v52 }
  0xaa   :  { %v142_v55 = vadd.f32 %v141_v51, %v138_v53 }
  0xab   :  { %v98_v56 = vpop.xlane.xlu1 %97 }
  0xac   :  { %v139_v57 = vadd.f32 %v131_v54, %v98_v56  ;;  %v184_v58 = vsel %vm182_vm3, -1e+09, %v142_v55 }
  0xad   :  { %vm186_vm4 = vcmp.ge.f32.partialorder %v184_v58, 0.0  ;;  %v188_v59 = vmul.f32 0.2, %v184_v58 }
  0xae   :  { %v143_v60 = vadd.f32 %v141_v51, %v139_v57 }
  0xaf   :  { %v190_v61 = vsel %vm186_vm4, %v184_v58, %v188_v59 }
  0xb0   :  { %v193_v62 = vsel %vm192_vm5, %v190_v61, -inf  ;;  %v185_v63 = vsel %vm183_vm6, -1e+09, %v143_v60 }
  0xb1   :  { %194 = vmax.xlane.f32.xlu0 %v193_v62  ;;  %vm187_vm7 = vcmp.ge.f32.partialorder %v185_v63, 0.0  ;;  %v189_v0 = vmul.f32 0.2, %v185_v63 }
  0xb3   :  { %v191_v2 = vsel %vm187_vm7, %v185_v63, %v189_v0 }
  0xb4   :  { %v196_v3 = vsel %vm192_vm5, %v191_v2, -inf }
  0xb5   :  { %197 = vmax.xlane.f32.xlu1 %v196_v3 }
 0x13e   :  { %v195_v8 = vpop.xlane.xlu0 %194 }
 0x13f   :  { %v199_v9 = vsub.f32 %v190_v61, %v195_v8 }
 0x141   :  { %v201_v10 = vmul.f32 1.442695, %v199_v9 }
 0x142   :  { %v198_v11 = vpop.xlane.xlu1 %197 }
 0x143   :  { %531 = vpow2.f32 %v201_v10  ;;  %v200_v13 = vsub.f32 %v191_v2, %v198_v11 }
 0x145   :  { %v203_v14 = vmul.f32 1.442695, %v200_v13 }
 0x147   :  { %533 = vpow2.f32 %v203_v14 }
 0x14d   :  { %v532_v16 = vpop.eup %531 }
 0x14e   :  { %v205_v17 = vsel %vm192_vm5, %v532_v16, 0.0 }
 0x14f   :  { %206 = vadd.xlane.f32.xlu0 %v205_v17 }
 0x151   :  { %v534_v19 = vpop.eup %533 }
 0x152   :  { %v208_v20 = vsel %vm192_vm5, %v534_v19, 0.0 }
 0x153   :  { %209 = vadd.xlane.f32.xlu1 %v208_v20 }
 0x1dc   :  { %v207_v22 = vpop.xlane.xlu0 %206 }
 0x1dd   :  { %535 = vrcp.f32 %v207_v22 }
 0x1e0   :  { %v210_v23 = vpop.xlane.xlu1 %209 }
 0x1e1   :  { %537 = vrcp.f32 %v210_v23 }
 0x1e7   :  { %v536_v24 = vpop.eup %535 }
 0x1e8   :  { %v213_v25 = vmul.f32 %v536_v24, %v532_v16 }
 0x1eb   :  { %v538_v26 = vpop.eup %537 }
 0x1ec   :  { %v214_v27 = vmul.f32 %v538_v26, %v534_v19 }
 0x1ed   :  { %539 = dma.done.wait [#allocation3], 4096 }
 0x1ee   :  { %540 = vsyncadd [#allocation3], 4294963200  ;;  %v220_v28 = vpack.c.bf16 %v633_v15, %v613_v7  ;;  %v318_v29 = vrot.slane %v213_v25, %v603_v5  ;;  %v311_v30 = vrot.slane %v213_v25, %v600_v4  ;;  %v324_v31 = vsub.s32 2, %v591_v1  ;;  %v222_v35 = vld [vmem:[#allocation2 + $0x8] sm:$0xff]  ;;  %v221_v36 = vld [vmem:[#allocation2] sm:$0xff] }
 0x1ef   :  { %v339_v32 = vrot.slane %v214_v27, %v603_v5  ;;  %v332_v34 = vrot.slane %v214_v27, %v600_v4  ;;  %v224_v37 = vld [vmem:[#allocation2 + $0x18] sm:$0xff]  ;;  %265 = vmatprep.subr.bf16.mxu0 %v222_v35  ;;  %v223_v15 = vld [vmem:[#allocation2 + $0x10] sm:$0xff]  ;;  %v226_v1 = vld [vmem:[#allocation2 + $0x28] sm:$0xff]  ;;  %v219_v2 = vpack.c.bf16 %v626_v12, %v608_v6  ;;  %v681_v10 = vcombine.high %v640_v18, %v640_v18 }
 0x1f0   :  { %297 = vmatprep.mubr.bf16.mxu0 %v220_v28  ;;  %320 = vbcast.lane.b32.xlu0 %v318_v29, 256  ;;  %v325_v33 = vrot.slane %v213_v25, %v324_v31  ;;  %v346_v7 = vrot.slane %v214_v27, %v324_v31  ;;  %v225_v38 = vld [vmem:[#allocation2 + $0x20] sm:$0xff]  ;;  %v228_v39 = vld [vmem:[#allocation2 + $0x38] sm:$0xff]  ;;  %v227_v40 = vld [vmem:[#allocation2 + $0x30] sm:$0xff]  ;;  %v686_v14 = vcombine.high %v647_v21, %v647_v21  ;;  %v438_v16 = vrot.slane %v640_v18, 1 }
 0x1f1   :  { %313 = vbcast.lane.b32.xlu1 %v311_v30, 256  ;;  %266 = vmatpush1.bf16.msra.mxu0 %v221_v36  ;;  %v230_v41 = vld [vmem:[#allocation2 + $0x48] sm:$0xff]  ;;  %v229_v42 = vld [vmem:[#allocation2 + $0x40] sm:$0xff]  ;;  %v232_v43 = vld [vmem:[#allocation2 + $0x58] sm:$0xff]  ;;  %v440_v17 = vrot.slane %v640_v18, 2  ;;  %v441_v23 = vrot.slane %v681_v10, 2 }
 0x1f2   :  { %267 = vmatprep.subr.bf16.mxu0 %v224_v37  ;;  %v231_v44 = vld [vmem:[#allocation2 + $0x50] sm:$0xff]  ;;  %v234_v45 = vld [vmem:[#allocation2 + $0x68] sm:$0xff]  ;;  %v233_v46 = vld [vmem:[#allocation2 + $0x60] sm:$0xff]  ;;  %v443_v25 = vrot.slane %v686_v14, 1  ;;  %vm490_vm10 = vcmask 1045509   ;;  %vm494_vm11 = vcmask 1046534  }
 0x1f3   :  { %v236_v47 = vld [vmem:[#allocation2 + $0x78] sm:$0xff]  ;;  %v235_v48 = vld [vmem:[#allocation2 + $0x70] sm:$0xff]  ;;  %v238_v49 = vld [vmem:[#allocation2 + $0x88] sm:$0xff] }
 0x1f4   :  { %341 = vbcast.lane.b32.xlu0 %v339_v32, 256  ;;  %v237_v50 = vld [vmem:[#allocation2 + $0x80] sm:$0xff]  ;;  %v240_v51 = vld [vmem:[#allocation2 + $0x98] sm:$0xff]  ;;  %v239_v52 = vld [vmem:[#allocation2 + $0x90] sm:$0xff] }
 0x1f5   :  { %327 = vbcast.lane.b32.xlu1 %v325_v33, 256  ;;  %268 = vmatpush1.bf16.msra.mxu0 %v223_v15  ;;  %v242_v53 = vld [vmem:[#allocation2 + $0xa8] sm:$0xff]  ;;  %v241_v54 = vld [vmem:[#allocation2 + $0xa0] sm:$0xff]  ;;  %v244_v55 = vld [vmem:[#allocation2 + $0xb8] sm:$0xff] }
 0x1f6   :  { %269 = vmatprep.subr.bf16.mxu0 %v226_v1  ;;  %v243_v56 = vld [vmem:[#allocation2 + $0xb0] sm:$0xff]  ;;  %v246_v57 = vld [vmem:[#allocation2 + $0xc8] sm:$0xff]  ;;  %v245_v58 = vld [vmem:[#allocation2 + $0xc0] sm:$0xff] }
 0x1f7   :  { %v248_v59 = vld [vmem:[#allocation2 + $0xd8] sm:$0xff]  ;;  %v247_v60 = vld [vmem:[#allocation2 + $0xd0] sm:$0xff]  ;;  %v250_v61 = vld [vmem:[#allocation2 + $0xe8] sm:$0xff] }
 0x1f8   :  { %334 = vbcast.lane.b32.xlu0 %v332_v34, 256  ;;  %v249_v62 = vld [vmem:[#allocation2 + $0xe0] sm:$0xff]  ;;  %v252_v63 = vld [vmem:[#allocation2 + $0xf8] sm:$0xff]  ;;  %v251_v0 = vld [vmem:[#allocation2 + $0xf0] sm:$0xff] }
 0x1f9   :  { %348 = vbcast.lane.b32.xlu1 %v346_v7, 256  ;;  %270 = vmatpush1.bf16.msra.mxu0 %v225_v38  ;;  %v253_v3 = vld [vmem:[%s739_s3] sm:$0x3] }
 0x1fa   :  { %271 = vmatprep.subr.bf16.mxu0 %v228_v39  ;;  %v258_v9 = vrot.slane %v253_v3, %v600_v4  ;;  %v262_v13 = vrot.slane %v253_v3, %v603_v5  ;;  %v439_v4 = vrot.slane %v681_v10, 1  ;;  %v442_v5 = vrot.slane %v647_v21, 1 }
 0x1fd   :  { %272 = vmatpush1.bf16.msra.mxu0 %v227_v40 }
 0x1fe   :  { %273 = vmatprep.subr.bf16.mxu0 %v230_v41 }
 0x201   :  { %274 = vmatpush1.bf16.msra.mxu0 %v229_v42 }
 0x202   :  { %275 = vmatprep.subr.bf16.mxu0 %v232_v43 }
 0x205   :  { %276 = vmatpush1.bf16.msra.mxu0 %v231_v44 }
 0x206   :  { %277 = vmatprep.subr.bf16.mxu0 %v234_v45 }
 0x209   :  { %278 = vmatpush1.bf16.msra.mxu0 %v233_v46 }
 0x20a   :  { %279 = vmatprep.subr.bf16.mxu0 %v236_v47 }
 0x20d   :  { %280 = vmatpush1.bf16.msra.mxu0 %v235_v48 }
 0x20e   :  { %281 = vmatprep.subr.bf16.mxu0 %v238_v49 }
 0x211   :  { %282 = vmatpush1.bf16.msra.mxu0 %v237_v50 }
 0x212   :  { %283 = vmatprep.subr.bf16.mxu0 %v240_v51 }
 0x215   :  { %284 = vmatpush1.bf16.msra.mxu0 %v239_v52 }
 0x216   :  { %285 = vmatprep.subr.bf16.mxu0 %v242_v53 }
 0x219   :  { %286 = vmatpush1.bf16.msra.mxu0 %v241_v54 }
 0x21a   :  { %287 = vmatprep.subr.bf16.mxu0 %v244_v55 }
 0x21d   :  { %288 = vmatpush1.bf16.msra.mxu0 %v243_v56 }
 0x21e   :  { %289 = vmatprep.subr.bf16.mxu0 %v246_v57 }
 0x221   :  { %290 = vmatpush1.bf16.msra.mxu0 %v245_v58 }
 0x222   :  { %291 = vmatprep.subr.bf16.mxu0 %v248_v59 }
 0x225   :  { %292 = vmatpush1.bf16.msra.mxu0 %v247_v60 }
 0x226   :  { %293 = vmatprep.subr.bf16.mxu0 %v250_v61 }
 0x229   :  { %294 = vmatpush1.bf16.msra.mxu0 %v249_v62 }
 0x22a   :  { %295 = vmatprep.subr.bf16.mxu0 %v252_v63 }
 0x22d   :  { %296 = vmatpush1.bf16.msra.mxu0 %v251_v0 }
 0x230   :  { %298 = vmatmul.mubr.bf16.vlgmr.msra.gmra.mrb[0].mxu0 %v219_v2 }
 0x262   :  { %v321_v11 = vpop.permute.xlu0 %320 }
 0x263   :  { %v314_v8 = vpop.permute.xlu1 %313 }
 0x266   :  { %v342_v31 = vpop.permute.xlu0 %341 }
 0x267   :  { %v328_v20 = vpop.permute.xlu1 %327 }
 0x303   :  { %v299_v6 = vpop.f32.mrb[0].mxu0 }
 0x304   :  { %v300_v12 = vadd.f32 %v299_v6, %v258_v9  ;;  %v301_v19 = vpop.f32.mrb[1].mxu0 }
 0x305   :  { %v302_v22 = vadd.f32 %v301_v19, %v262_v13  ;;  %v303_v24 = vpop.f32.mrb[2].mxu0 }
 0x306   :  { %v350_v26 = vmul.f32 %v314_v8, %v300_v12  ;;  %v352_v27 = vmul.f32 %v321_v11, %v300_v12  ;;  %v354_v28 = vmul.f32 %v328_v20, %v300_v12  ;;  %v694_v29 = vadd.f32 %v303_v24, %v258_v9  ;;  %v305_v30 = vpop.f32.mrb[3].mxu0 }
 0x307   :  { %v351_v32 = vmul.f32 %v314_v8, %v302_v22  ;;  %v353_v33 = vmul.f32 %v321_v11, %v302_v22  ;;  %v355_v34 = vmul.f32 %v328_v20, %v302_v22  ;;  %v696_v35 = vadd.f32 %v305_v30, %v262_v13 }
 0x308   :  { %v362_v36 = vrot.slane %v350_v26, 4  ;;  %v374_v37 = vrot.slane %v352_v27, 4  ;;  %v386_v7 = vrot.slane %v354_v28, 4  ;;  %v358_v15 = vmul.f32 %v342_v31, %v694_v29 }
 0x309   :  { %v368_v1 = vrot.slane %v351_v32, 4  ;;  %v380_v38 = vrot.slane %v353_v33, 4  ;;  %v392_v39 = vrot.slane %v355_v34, 4  ;;  %v359_v40 = vmul.f32 %v342_v31, %v696_v35  ;;  %v335_v31 = vpop.permute.xlu0 %334 }
 0x30a   :  { %v363_v41 = vadd.f32 %v362_v36, %v350_v26  ;;  %v375_v42 = vadd.f32 %v374_v37, %v352_v27  ;;  %v387_v43 = vadd.f32 %v386_v7, %v354_v28  ;;  %v410_v44 = vrot.slane %v358_v15, 4 }
 0x30b   :  { %v369_v45 = vadd.f32 %v368_v1, %v351_v32  ;;  %v381_v46 = vadd.f32 %v380_v38, %v353_v33  ;;  %v393_v47 = vadd.f32 %v392_v39, %v355_v34  ;;  %v416_v48 = vrot.slane %v359_v40, 4  ;;  %v349_v32 = vpop.permute.xlu1 %348 }
 0x30c   :  { %v364_v49 = vrot.slane %v363_v41, 2  ;;  %v376_v50 = vrot.slane %v375_v42, 2  ;;  %v388_v51 = vrot.slane %v387_v43, 2  ;;  %v411_v52 = vadd.f32 %v410_v44, %v358_v15 }
 0x30d   :  { %v370_v53 = vrot.slane %v369_v45, 2  ;;  %v382_v54 = vrot.slane %v381_v46, 2  ;;  %v394_v55 = vrot.slane %v393_v47, 2  ;;  %v417_v56 = vadd.f32 %v416_v48, %v359_v40 }
 0x30e   :  { %v365_v57 = vadd.f32 %v364_v49, %v363_v41  ;;  %v377_v58 = vadd.f32 %v376_v50, %v375_v42  ;;  %v389_v59 = vadd.f32 %v388_v51, %v387_v43  ;;  %v412_v60 = vrot.slane %v411_v52, 2 }
 0x30f   :  { %v371_v61 = vadd.f32 %v370_v53, %v369_v45  ;;  %v383_v62 = vadd.f32 %v382_v54, %v381_v46  ;;  %v395_v63 = vadd.f32 %v394_v55, %v393_v47  ;;  %v418_v0 = vrot.slane %v417_v56, 2 }
 0x310   :  { %v366_v2 = vrot.slane %v365_v57, 1  ;;  %v378_v3 = vrot.slane %v377_v58, 1  ;;  %v390_v8 = vrot.slane %v389_v59, 1  ;;  %v413_v9 = vadd.f32 %v412_v60, %v411_v52 }
 0x311   :  { %v372_v11 = vrot.slane %v371_v61, 1  ;;  %v384_v13 = vrot.slane %v383_v62, 1  ;;  %v396_v6 = vrot.slane %v395_v63, 1  ;;  %v419_v12 = vadd.f32 %v418_v0, %v417_v56 }
 0x312   :  { %v367_v19 = vadd.f32 %v366_v2, %v365_v57  ;;  %v379_v20 = vadd.f32 %v378_v3, %v377_v58  ;;  %v391_v22 = vadd.f32 %v390_v8, %v389_v59  ;;  %v414_v24 = vrot.slane %v413_v9, 1 }
 0x313   :  { %v373_v26 = vadd.f32 %v372_v11, %v371_v61  ;;  %v385_v27 = vadd.f32 %v384_v13, %v383_v62  ;;  %v397_v28 = vadd.f32 %v396_v6, %v395_v63  ;;  %v420_v30 = vrot.slane %v419_v12, 1 }
 0x314   :  { %v458_v33 = vadd.f32 %v367_v19, %v640_v18  ;;  %v460_v34 = vadd.f32 %v438_v16, %v379_v20  ;;  %v462_v36 = vadd.f32 %v440_v17, %v391_v22  ;;  %v415_v37 = vadd.f32 %v414_v24, %v413_v9 }
 0x315   :  { %v459_v7 = vadd.f32 %v681_v10, %v373_v26  ;;  %v461_v15 = vadd.f32 %v439_v4, %v385_v27  ;;  %v463_v1 = vadd.f32 %v441_v23, %v397_v28  ;;  %v421_v38 = vadd.f32 %v420_v30, %v419_v12 }
 0x316   :  { %v466_v39 = vadd.f32 %v442_v5, %v415_v37  ;;  %v356_v40 = vmul.f32 %v335_v31, %v694_v29  ;;  %v357_v16 = vmul.f32 %v335_v31, %v696_v35  ;;  %v360_v18 = vmul.f32 %v349_v32, %v694_v29 }
 0x317   :  { %v482_v17 = vcombine.low %v458_v33, %v459_v7  ;;  %v483_v41 = vcombine.low %v460_v34, %v461_v15  ;;  %v484_v42 = vcombine.low %v462_v36, %v463_v1  ;;  %v467_v43 = vadd.f32 %v443_v25, %v421_v38 }
 0x318   :  { %v398_v4 = vrot.slane %v356_v40, 4  ;;  %v404_v44 = vrot.slane %v357_v16, 4  ;;  %v361_v10 = vmul.f32 %v349_v32, %v696_v35  ;;  %v422_v23 = vrot.slane %v360_v18, 4 }
 0x319   :  { %v488_v45 = vrot.slane %v483_v41, 7  ;;  %v486_v5 = vcombine.low %v466_v39, %v467_v43  ;;  %v492_v50 = vrot.slane %v484_v42, 6  ;;  %v444_v63 = vrot.slane %v647_v21, 2 }
 0x31a   :  { %v399_v46 = vadd.f32 %v398_v4, %v356_v40  ;;  %v405_v47 = vadd.f32 %v404_v44, %v357_v16  ;;  %v423_v48 = vadd.f32 %v422_v23, %v360_v18  ;;  %v428_v49 = vrot.slane %v361_v10, 4 }
 0x31b   :  { %v489_v29 = vsel %vm132_vm8, %v488_v45, %v482_v17  ;;  %v445_v9 = vrot.slane %v686_v14, 2  ;;  %v496_v12 = vrot.slane %v486_v5, 7 }
 0x31c   :  { %v400_v51 = vrot.slane %v399_v46, 2  ;;  %v406_v52 = vrot.slane %v405_v47, 2  ;;  %v491_v25 = vsel %vm490_vm10, %v488_v45, %v489_v29  ;;  %v424_v53 = vrot.slane %v423_v48, 2 }
 0x31d   :  { %v493_v54 = vsel %vm133_vm9, %v492_v50, %v491_v25  ;;  %v429_v35 = vadd.f32 %v428_v49, %v361_v10 }
 0x31e   :  { %v401_v55 = vadd.f32 %v400_v51, %v399_v46  ;;  %v407_v56 = vadd.f32 %v406_v52, %v405_v47  ;;  %v425_v57 = vadd.f32 %v424_v53, %v423_v48  ;;  %v495_v58 = vsel %vm494_vm11, %v492_v50, %v493_v54 }
 0x31f   :  { %v430_v59 = vrot.slane %v429_v35, 2  ;;  %504 = vst [vmem:[%s743_s7] sm:$0x77] %v495_v58 }
 0x320   :  { %v402_v60 = vrot.slane %v401_v55, 1  ;;  %v408_v61 = vrot.slane %v407_v56, 1  ;;  %v426_v62 = vrot.slane %v425_v57, 1 }
 0x321   :  { %v431_v0 = vadd.f32 %v430_v59, %v429_v35 }
 0x322   :  { %v403_v2 = vadd.f32 %v402_v60, %v401_v55  ;;  %v409_v3 = vadd.f32 %v408_v61, %v407_v56  ;;  %v427_v8 = vadd.f32 %v426_v62, %v425_v57 }
 0x323   :  { %v432_v11 = vrot.slane %v431_v0, 1 }
 0x324   :  { %v464_v13 = vadd.f32 %v403_v2, %v647_v21  ;;  %v465_v6 = vadd.f32 %v686_v14, %v409_v3  ;;  %v468_v20 = vadd.f32 %v444_v63, %v427_v8 }
 0x325   :  { %v433_v19 = vadd.f32 %v432_v11, %v431_v0 }
 0x326   :  { %v485_v22 = vcombine.low %v464_v13, %v465_v6 }
 0x327   :  { %v469_v24 = vadd.f32 %v445_v9, %v433_v19 }
 0x328   :  { %v497_v26 = vsel %vm132_vm8, %v496_v12, %v485_v22 }
 0x329   :  { %v498_v27 = vsel %vm490_vm10, %v496_v12, %v497_v26  ;;  %v487_v28 = vcombine.low %v468_v20, %v469_v24 }
 0x32b   :  { %v499_v30 = vrot.slane %v487_v28, 6 }
 0x32d   :  { %v500_v31 = vsel %vm133_vm9, %v499_v30, %v498_v27 }
 0x32e   :  { %v501_v32 = vsel %vm494_vm11, %v499_v30, %v500_v31 }
 0x32f   :  { %505 = vst [vmem:[%s743_s7 + $0x8] sm:$0x77] %v501_v32 }
 0x330   :  { %510 = vsyncmov [#allocation3] }
 0x333   :  { %s511_s11 = vpop.sfrf %510 }
 0x334   :  { %p520_p0 = scmp.ne.s32.totalorder %s511_s11, 0 }
 0x336   :  { %515 = shalt.err (%p520_p0)  }

</bundles_post_ra>
